<compile_context>
chip_gen: v7x
topology: tpu7x:2x2x1
jax: 0.10.0
libtpu: 0.0.40
codegen_flags: <defaults>
</compile_context>

<pallas_src>
from functools import partial

import numpy as np
import jax
import jax.numpy as jnp
from jax.experimental import pallas as pl
from jax.experimental.pallas import tpu as pltpu


# ---------------------------------------------------------------------------
# Host-side SDF helpers (numpy) — replacements for the scipy/skimage calls.
# ---------------------------------------------------------------------------
_BIG = 1e12  # larger than any achievable squared image distance


def _edt_1d_sq(f):
    """1-D squared distance transform (Felzenszwalb & Huttenlocher)."""
    n = f.shape[0]
    d = np.empty(n, dtype=np.float64)
    v = np.zeros(n, dtype=np.int64)
    z = np.empty(n + 1, dtype=np.float64)
    k = 0
    z[0] = -np.inf
    z[1] = np.inf
    for q in range(1, n):
        s = ((f[q] + q * q) - (f[v[k]] + v[k] * v[k])) / (2.0 * (q - v[k]))
        while s <= z[k]:
            k -= 1
            s = ((f[q] + q * q) - (f[v[k]] + v[k] * v[k])) / (2.0 * (q - v[k]))
        k += 1
        v[k] = q
        z[k] = s
        z[k + 1] = np.inf
    k = 0
    for q in range(n):
        while z[k + 1] < q:
            k += 1
        d[q] = (q - v[k]) ** 2 + f[v[k]]
    return d


def _edt(mask):
    """Exact Euclidean distance of True pixels to the nearest False pixel
    (equivalent to scipy.ndimage.distance_transform_edt)."""
    mask = np.asarray(mask, dtype=bool)
    H, W = mask.shape
    if not (~mask).any():
        # No background pixels: distance is ill-defined; return zeros.
        return np.zeros((H, W), dtype=np.float64)
    f = np.where(mask, _BIG, 0.0).astype(np.float64)
    d = np.empty((H, W), dtype=np.float64)
    for j in range(W):
        d[:, j] = _edt_1d_sq(f[:, j])
    for i in range(H):
        d[i, :] = _edt_1d_sq(d[i, :])
    return np.sqrt(d)


def _inner_boundary(mask):
    """Foreground pixels that touch background (4-connectivity)."""
    # TODO(synk): border handling approximates skimage.find_boundaries(mode='inner').
    mask = np.asarray(mask, dtype=bool)
    pad = np.pad(mask, 1, mode="edge")
    nb_bg = (~pad[:-2, 1:-1]) | (~pad[2:, 1:-1]) | (~pad[1:-1, :-2]) | (~pad[1:-1, 2:])
    return mask & nb_bg


def _norm01(d):
    lo = d.min()
    rng = d.max() - lo
    if rng <= 0.0:
        return np.zeros_like(d)
    return (d - lo) / rng


def _sdf_single(posmask):
    """Normalized SDF of one binary mask in [-1, 1]; 0 on the boundary."""
    negmask = ~posmask
    posdis = _edt(posmask)
    negdis = _edt(negmask)
    boundary = _inner_boundary(posmask)
    sdf = _norm01(negdis) - _norm01(posdis)
    sdf[boundary] = 0.0
    return sdf


def compute_sdf_map(img_gt, out_shape):
    """(B, H, W) single map.  In compute_sdf1_1, channel 0 is all zeros and
    channels 1..C-1 are identical copies of this map."""
    img_gt = np.asarray(img_gt).astype(np.uint8)
    B = out_shape[0]
    H, W = out_shape[2], out_shape[3]
    sdf = np.zeros((B, H, W), dtype=np.float64)
    for b in range(B):
        posmask = img_gt[b].astype(bool)
        if posmask.any():
            sdf[b] = _sdf_single(posmask)
    return sdf


def compute_sdf1_1(img_gt, out_shape):
    """Full (B, C, H, W) SDF tensor — exact semantics of BoundaryLoss.compute_sdf1_1."""
    sdf = compute_sdf_map(img_gt, out_shape)
    out = np.zeros(out_shape, dtype=np.float64)
    for c in range(1, out_shape[1]):
        out[:, c] = sdf
    return out


# ---------------------------------------------------------------------------
# Pallas kernel: per-position softmax "background" weight + sdf*(1-p0),
# accumulated into a resident (1, 8, 128) output block.
# ---------------------------------------------------------------------------
def _boundary_loss_kernel(logits_ref, sdf_ref, acc_ref):
    # logits_ref: (1, C, TB, 8, 128)   sdf_ref: (1, TB, 8, 128)
    # acc_ref   : (1, 8, 128) f32 output block, resident across the steps axis.
    @pl.when(pl.program_id(1) == 0)
    def _():
        acc_ref[...] = jnp.zeros_like(acc_ref)

    # TODO(synk): for bf16 inputs a (..., 16, 128) grouping would match the
    # sublane packing better; the f32 upcast below keeps any dtype correct.
    x = logits_ref[0].astype(jnp.float32)            # (C, TB, 8, 128)
    x0 = x[0]                                        # (TB, 8, 128)
    # Stable sigmoid form: p0 = 1 / (1 + s), s = sum_{c>0} exp(x_c - x_0).
    # Drops the C-way max pass + C subtractions + one exp slab vs. full softmax.
    d = jnp.minimum(x[1:] - x0, 80.0)                # (C-1, TB, 8, 128), clamp -> finite exp
    s = jnp.sum(jnp.exp(d), axis=0)                  # (TB, 8, 128)  VPU adds across C-1 slabs
    w = s / (1.0 + s)                                # == 1 - p0, exact divide
    # sum_c softmax_c * sdf_c  ==  sdf * (1 - p0)   (sdf_0 == 0, sdf_{c>0} equal)
    contrib = sdf_ref[0] * w                         # (TB, 8, 128)
    acc_ref[...] += jnp.sum(contrib, axis=0, keepdims=True)


@partial(jax.jit, static_argnames=("tb", "steps"))
def _boundary_loss_device(logits, sdf_blocks, *, tb, steps):
    B, C, H, W = logits.shape
    hw = H * W
    hw_pad = steps * tb * 1024

    x = logits.reshape(B, C, hw)
    if hw_pad != hw:
        # Padded logits give a well-defined softmax; padded sdf is 0, so padded
        # positions contribute exactly 0.
        x = jnp.pad(x, ((0, 0), (0, 0), (0, hw_pad - hw)))
    x = x.reshape(B, C, steps * tb, 8, 128)          # free reshape when no pad

    # Double-buffered input blocks + elementwise intermediates + margin.
    vmem_limit = int(min(48 * 2**20,
                         max(16 * 2**20, (4 * C + 2) * tb * 4096 + (4 << 20))))

    partials = pl.pallas_call(
        _boundary_loss_kernel,
        out_shape=jax.ShapeDtypeStruct((B, 8, 128), jnp.float32),
        grid_spec=pltpu.PrefetchScalarGridSpec(
            num_scalar_prefetch=0,
            grid=(B, steps),
            in_specs=[
                pl.BlockSpec((1, C, tb, 8, 128), lambda b, i: (b, 0, i, 0, 0)),
                pl.BlockSpec((1, tb, 8, 128), lambda b, i: (b, i, 0, 0)),
            ],
            out_specs=pl.BlockSpec((1, 8, 128), lambda b, i: (b, 0, 0)),
        ),
        compiler_params=pltpu.CompilerParams(
            dimension_semantics=("parallel", "arbitrary"),
            vmem_limit_bytes=vmem_limit,
        ),
    )(x, sdf_blocks)

    # Single cross-lane reduce + .mean() normalization (by B*C*H*W).
    return jnp.sum(partials) / jnp.float32(B * C * H * W)


class BoundaryLossPallas:
    # Max (8,128) groups per grid step.  256 groups -> >= 1 MiB per channel
    # slab per block, so the ~0.35us/step pipeline overhead is well amortized
    # while double-buffered blocks + intermediates stay far below v7x's 64 MiB
    # physical VMEM (v5e/v6e have 128 MiB, so this is safe everywhere).
    _TB_MAX = 256

    def __init__(self, classes):
        # idx == range(classes) in the original module -> identity channel
        # gather, so the pc / dc selections are no-ops.
        self.idx = [i for i in range(classes)]

    def __call__(self, outputs, gt):
        # outputs: (B, C, H, W) float logits (NCHW); gt: (B, H, W) int labels
        outputs = jnp.asarray(outputs)
        B, C, H, W = outputs.shape
        hw = H * W
        rb = -(-hw // 1024)                        # number of (8,128) groups per image

        # Host-side SDF map (numpy), padded host-side to the tiled extent.
        sdf_map = compute_sdf_map(np.asarray(gt), (B, C, H, W)).astype(np.float32)

        # Tile sizing: cap by VMEM (blocks + intermediates <= ~44 MiB), then
        # rebalance rb over the step count so tail padding is < one step.
        tb_cap = max(8, min(self._TB_MAX, (44 * 2**20) // ((4 * C + 2) * 4096)))
        steps = -(-rb // tb_cap)
        tb = -(-rb // steps)
        hw_pad = steps * tb * 1024

        sdf_flat = sdf_map.reshape(B, hw)
        if hw_pad != hw:
            sdf_flat = np.pad(sdf_flat, ((0, 0), (0, hw_pad - hw)))
        sdf_blocks = jnp.asarray(sdf_flat.reshape(B, steps * tb, 8, 128))

        return _boundary_loss_device(outputs, sdf_blocks, tb=tb, steps=steps)


if __name__ == "__main__":
    key = jax.random.PRNGKey(0)
    k1, k2 = jax.random.split(key)
    B, C, H, W = 2, 4, 16, 16

    outputs = jax.random.normal(k1, (B, C, H, W), dtype=jnp.float32)   # logits
    gt = jax.random.randint(k2, (B, H, W), 0, C, dtype=jnp.int32)      # labels

    loss_fn = BoundaryLossPallas(classes=C)
    loss = loss_fn(outputs, gt)
    jax.block_until_ready(loss)

    # Plain-JAX reference (full C-channel SDF tensor, exact module semantics).
    sdf_full = compute_sdf1_1(np.asarray(gt), (B, C, H, W)).astype(np.float32)
    ref = jnp.mean(jax.nn.softmax(outputs, axis=1) * jnp.asarray(sdf_full))
    assert np.allclose(np.asarray(loss), np.asarray(ref), rtol=1e-4, atol=1e-5), (loss, ref)

    print("KERNEL_OK")
</pallas_src>

<mosaic_0001>
module attributes {stable_mosaic.version = 11 : i64} {
  func.func @_boundary_loss_kernel(%arg0: i32, %arg1: i32, %arg2: memref<1x4x1x8x128xf32, #tpu.memory_space<vmem>>, %arg3: memref<1x1x8x128xf32, #tpu.memory_space<vmem>>, %arg4: memref<1x8x128xf32, #tpu.memory_space<vmem>>) attributes {dimension_semantics = [#tpu.dimension_semantics<parallel>, #tpu.dimension_semantics<arbitrary>], iteration_bounds = array<i64: 2, 1>, scalar_prefetch = 0 : i64, scratch_operands = 0 : i64, tpu.core_type = #tpu.core_type<tc>, window_params = [{transform_indices = @transform_0, window_bounds = array<i64: 1, 4, 1, 8, 128>}, {transform_indices = @transform_1, window_bounds = array<i64: 1, 1, 8, 128>}, {transform_indices = @transform_2, window_bounds = array<i64: 1, 8, 128>}]} {
    %c0_i32 = arith.constant 0 : i32
    %0 = arith.cmpi eq, %arg1, %c0_i32 : i32
    %1 = arith.extui %0 : i1 to i32
    %c0_i32_0 = arith.constant 0 : i32
    %2 = arith.cmpi ne, %1, %c0_i32_0 : i32
    scf.if %2 {
      %cst_18 = arith.constant 0.000000e+00 : f32
      %26 = vector.broadcast %cst_18 : f32 to vector<1x8x128xf32>
      %c0_19 = arith.constant 0 : index
      %c0_20 = arith.constant 0 : index
      %c0_21 = arith.constant 0 : index
      %27 = vector.load %arg4[%c0_19, %c0_20, %c0_21] : memref<1x8x128xf32, #tpu.memory_space<vmem>>, vector<1x8x128xf32>
      tpu.vector_store %arg4[%c0_19, %c0_20, %c0_21], %26 {strides = array<i32>} : memref<1x8x128xf32, #tpu.memory_space<vmem>>, vector<1x8x128xf32>,
    } else {
    }
    %c0 = arith.constant 0 : index
    %c0_1 = arith.constant 0 : index
    %c0_2 = arith.constant 0 : index
    %c0_3 = arith.constant 0 : index
    %c0_4 = arith.constant 0 : index
    %3 = vector.load %arg2[%c0, %c0_1, %c0_2, %c0_3, %c0_4] : memref<1x4x1x8x128xf32, #tpu.memory_space<vmem>>, vector<1x4x1x8x128xf32>
    %4 = vector.shape_cast %3 : vector<1x4x1x8x128xf32> to vector<4x1x8x128xf32>
    %5 = vector.extract_strided_slice %4 {offsets = [0, 0, 0, 0], sizes = [1, 1, 8, 128], strides = [1, 1, 1, 1]} : vector<4x1x8x128xf32> to vector<1x1x8x128xf32>
    %6 = vector.shape_cast %5 : vector<1x1x8x128xf32> to vector<1x8x128xf32>
    %7 = vector.extract_strided_slice %4 {offsets = [1, 0, 0, 0], sizes = [3, 1, 8, 128], strides = [1, 1, 1, 1]} : vector<4x1x8x128xf32> to vector<3x1x8x128xf32>
    %8 = vector.shape_cast %6 : vector<1x8x128xf32> to vector<1x1x8x128xf32>
    %9 = vector.broadcast %8 : vector<1x1x8x128xf32> to vector<3x1x8x128xf32>
    %10 = arith.subf %7, %9 : vector<3x1x8x128xf32>
    %cst = arith.constant 8.000000e+01 : f32
    %11 = vector.broadcast %cst : f32 to vector<3x1x8x128xf32>
    %12 = arith.minimumf %10, %11 : vector<3x1x8x128xf32>
    %13 = math.exp %12 : vector<3x1x8x128xf32>
    %cst_5 = arith.constant dense<0.000000e+00> : vector<1x8x128xf32>
    %14 = vector.multi_reduction <add>, %13, %cst_5 [0] : vector<3x1x8x128xf32> to vector<1x8x128xf32>
    %cst_6 = arith.constant 1.000000e+00 : f32
    %15 = vector.broadcast %cst_6 : f32 to vector<1x8x128xf32>
    %16 = arith.addf %15, %14 : vector<1x8x128xf32>
    %17 = arith.divf %14, %16 : vector<1x8x128xf32>
    %c0_7 = arith.constant 0 : index
    %c0_8 = arith.constant 0 : index
    %c0_9 = arith.constant 0 : index
    %c0_10 = arith.constant 0 : index
    %18 = vector.load %arg3[%c0_7, %c0_8, %c0_9, %c0_10] : memref<1x1x8x128xf32, #tpu.memory_space<vmem>>, vector<1x1x8x128xf32>
    %19 = vector.shape_cast %18 : vector<1x1x8x128xf32> to vector<1x8x128xf32>
    %20 = arith.mulf %19, %17 : vector<1x8x128xf32>
    %c0_11 = arith.constant 0 : index
    %c0_12 = arith.constant 0 : index
    %c0_13 = arith.constant 0 : index
    %21 = vector.load %arg4[%c0_11, %c0_12, %c0_13] : memref<1x8x128xf32, #tpu.memory_space<vmem>>, vector<1x8x128xf32>
    %cst_14 = arith.constant dense<0.000000e+00> : vector<8x128xf32>
    %22 = vector.multi_reduction <add>, %20, %cst_14 [0] : vector<1x8x128xf32> to vector<8x128xf32>
    %23 = vector.shape_cast %22 : vector<8x128xf32> to vector<1x8x128xf32>
    %24 = arith.addf %21, %23 : vector<1x8x128xf32>
    %c0_15 = arith.constant 0 : index
    %c0_16 = arith.constant 0 : index
    %c0_17 = arith.constant 0 : index
    %25 = vector.load %arg4[%c0_15, %c0_16, %c0_17] : memref<1x8x128xf32, #tpu.memory_space<vmem>>, vector<1x8x128xf32>
    tpu.vector_store %arg4[%c0_15, %c0_16, %c0_17], %24 {strides = array<i32>} : memref<1x8x128xf32, #tpu.memory_space<vmem>>, vector<1x8x128xf32>,
    return
  }
  func.func @transform_0(%arg0: i32, %arg1: i32) -> (i32, i32, i32, i32, i32) {
    %c0_i32 = arith.constant 0 : i32
    %c0_i32_0 = arith.constant 0 : i32
    %c0_i32_1 = arith.constant 0 : i32
    %c0_i32_2 = arith.constant 0 : i32
    return %arg0, %c0_i32, %arg1, %c0_i32_0, %c0_i32_1 : i32, i32, i32, i32, i32
  }
  func.func @transform_1(%arg0: i32, %arg1: i32) -> (i32, i32, i32, i32) {
    %c0_i32 = arith.constant 0 : i32
    %c0_i32_0 = arith.constant 0 : i32
    %c0_i32_1 = arith.constant 0 : i32
    return %arg0, %arg1, %c0_i32, %c0_i32_0 : i32, i32, i32, i32
  }
  func.func @transform_2(%arg0: i32, %arg1: i32) -> (i32, i32, i32) {
    %c0_i32 = arith.constant 0 : i32
    %c0_i32_0 = arith.constant 0 : i32
    %c0_i32_1 = arith.constant 0 : i32
    return %arg0, %c0_i32, %c0_i32_0 : i32, i32, i32
  }
}

</mosaic_0001>

<bundles_post_ra>
// kernel: _boundary_loss_device.1
= control target key start
LH: loop header
LB: loop body
LE: loop exit
PB: predicated region body
PF: predicated region fallthrough
CT: control target
= control target key end

     0   :  { %s391_s9 = smov 0   ;;  %s393_s10 = smov 0   ;;  %s431_s0 = inlined_call_operand.vmem [shape: f32[2,4,1,8,128], index: 0, kind: input, shape index: {}]   ;;  %s432_s1 = inlined_call_operand.vmem [shape: f32[2,1,8,128], index: 1, kind: input, shape index: {}]   ;;  %s433_s2 = inlined_call_operand.vmem [shape: f32[2,8,128], index: 2, kind: output, shape index: {}]  }
   0x1   :  { %s395_s11 = smov 0  }
   0x2 LB: > { %s24_s12 = sadd.s32 1, %s370_s10  ;;  %p311_p0 = scmp.ge.s32.totalorder %s374_s11, 1  ;;  %s374_s11 = sphi %s395_s11, %s12_s11   ;;  %s370_s10 = sphi %s393_s10, %s435_s10   ;;  %s366_s9 = sphi %s391_s9, %s434_s9  }
   0x3   : > { %p26_p1 = scmp.ge.s32.totalorder %s24_s12, 2  ;;  %p143_p2 = scmp.lt.s32.totalorder %s374_s11, 3 }
   0x5   : > { %s437_s12 = smov (%p26_p1, %s24_s12), 0  ;;  %p144_p3 = pnand %p311_p0, %p143_p2 }
   0x6   : > { %p174_p4 = scmp.lt.s32.totalorder (!%p144_p3), %s366_s9, 1 }
   0x7   : > { %147 = sbr.rel (%p144_p3) target bundleno = 58 (0x3a), region = 28 }
   0xe   : > { %s439_s9 = smov (!%p174_p4, %s366_s9), 1 }
   0xf   : > { %s318_s13 = sshll.u32 %s439_s9, 5  ;;  %s314_s17 = sshll.u32 %s439_s9, 3 }
  0x10   : > { %s181_s16 = scalar_lea.vmem %s431_s0, %s318_s13  ;;  %s188_s20 = scalar_lea.vmem %s432_s1, %s314_s17 }
  0x11   : > { %v198_v0 = vld [vmem:[%s181_s16] sm:$0xff]  ;;  %v199_v1 = vld [vmem:[%s181_s16 + $0x8] sm:$0xff]  ;;  %v200_v2 = vld [vmem:[%s181_s16 + $0x10] sm:$0xff]  ;;  %s192_s23 = scalar_lea.vmem %s433_s2, %s314_s17 }
  0x12   : > { %v201_v3 = vld [vmem:[%s181_s16 + $0x18] sm:$0xff]  ;;  %v202_v4 = vsub.f32 %v199_v1, %v198_v0  ;;  %v203_v5 = vsub.f32 %v200_v2, %v198_v0  ;;  %v219_v20 = vld [vmem:[%s188_s20] sm:$0xff] }
  0x13   : > { %v204_v6 = vsub.f32 %v201_v3, %v198_v0 }
  0x14   : > { %v205_v7 = vmin.f32 %v202_v4, 80.0  ;;  %v206_v8 = vmin.f32 %v203_v5, 80.0 }
  0x15   : > { %v207_v9 = vmin.f32 %v204_v6, 80.0 }
  0x16   : > { %v208_v10 = vmul.f32 1.442695, %v205_v7  ;;  %v210_v11 = vmul.f32 1.442695, %v206_v8 }
  0x17   : > { %v212_v12 = vmul.f32 1.442695, %v207_v9 }
  0x18   : > { %344 = vpow2.f32 %v208_v10 }
  0x19   : > { %346 = vpow2.f32 %v210_v11 }
  0x1a   : > { %348 = vpow2.f32 %v212_v12 }
  0x22   : > { %v345_v13 = vpop.eup %344 }
  0x23   : > { %v347_v14 = vpop.eup %346 }
  0x24   : > { %v349_v15 = vpop.eup %348  ;;  %v214_v16 = vadd.f32 %v347_v14, %v345_v13 }
  0x26   : > { %v215_v17 = vadd.f32 %v349_v15, %v214_v16 }
  0x28   : > { %v216_v18 = vadd.f32 1.0, %v215_v17 }
  0x2a   : > { %350 = vrcp.f32 %v216_v18 }
  0x34   : > { %v351_v19 = vpop.eup %350 }
  0x35   : > { %v218_v21 = vmul.f32 %v351_v19, %v215_v17 }
  0x37   : > { %v220_v22 = vmul.f32 %v219_v20, %v218_v21 }
  0x39   : > { %224 = vst [vmem:[%s192_s23] sm:$0xff] %v220_v22 }
  0x3a PF: > { %s12_s11 = sadd.s32 1, %s374_s11   ;;  %s434_s9 = smov %s370_s10 }
  0x3b   : > { %p9_p5 = scmp.ge.s32.totalorder %s12_s11, 4   ;;  %s435_s10 = smov %s437_s12 }
  0x3d   :  { %11 = sbr.rel (!%p9_p5) target bundleno = 2 (0x2), region = 65 }

</bundles_post_ra>
